<compile_context>
chip_gen: v6e
topology: v6e:2x2x1
jax: 0.10.0
libtpu: 0.0.40
codegen_flags: <defaults>
</compile_context>

<pallas_src>
import functools

import jax
import jax.numpy as jnp
from jax import lax
from jax.experimental import pallas as pl
from jax.experimental.pallas import tpu as pltpu

LEAKY_SLOPE = 0.01   # nn.LeakyReLU() default
EPS = 1e-5           # nn.InstanceNorm2d default eps


def _instance_norm_lrelu(x, inv_hw):
    """x: (C, H*W) f32.  Two-pass (centered) stats over the spatial (lane)
    axis, biased variance, then LeakyReLU.  All f32 (works on v5e VPU)."""
    mean = jnp.sum(x, axis=1, keepdims=True) * inv_hw
    d = x - mean
    var = jnp.sum(d * d, axis=1, keepdims=True) * inv_hw
    xn = d * lax.rsqrt(var + EPS)
    return jnp.where(xn >= 0, xn, LEAKY_SLOPE * xn)


def resblock_kernel(x_ref, w1_ref, w2_ref, wb_ref, mw_ref, mh_ref, o_ref,
                    *, H, W, ks, dil, pad, mxu_dtype):
    HW = H * W
    inv_hw = jnp.float32(1.0 / HW)

    x = x_ref[...].astype(jnp.float32)          # (Cin, H*W), lane-dense
    mw = mw_ref[...]                            # (ks, H*W) static 0/1 masks (w)
    mh = mh_ref[...]                            # (ks, H*W) static 0/1 masks (h)

    d_off = [k * dil - pad for k in range(ks)]  # per-tap dh / dw offsets

    def conv(act, w_ref_, fold_dh0=None):
        """'Same'-padded ks x ks conv of act (C, H*W) with per-tap weights
        w_ref_[kh*ks + kw] of shape (Cout, C):
            z_kw   = maskW(dw) * roll(act, dw)         ks-1 lane rolls (C rows)
            acc_kh = sum_kw w[kh,kw] @ z_kw            f32 MXU accumulation
            y      = sum_kh maskH(dh) * roll(acc_kh, dh*W)
        The dh*W roll commutes with the channel contraction, so it acts on the
        small (Cout, H*W) accumulator, not the activation.  `fold_dh0` (the
        1x1 bypass) is folded into the dh == 0 accumulator for free."""
        zs = []
        for kw, dw in enumerate(d_off):
            if dw == 0:
                z = act
            else:
                z = pltpu.roll(act, shift=(-dw) % HW, axis=1) * mw[kw:kw + 1, :]
            zs.append(z.astype(mxu_dtype))

        y = None
        for kh, dh in enumerate(d_off):
            acc = None
            for kw in range(ks):
                t = jnp.dot(w_ref_[kh * ks + kw], zs[kw],
                            preferred_element_type=jnp.float32)
                acc = t if acc is None else acc + t
            if dh == 0 and fold_dh0 is not None:
                acc = acc + fold_dh0            # folded bypass: no roll/mask
                fold_dh0 = None
            if dh != 0:
                acc = (pltpu.roll(acc, shift=(-dh * W) % HW, axis=1)
                       * mh[kh:kh + 1, :])
            y = acc if y is None else y + acc
        if fold_dh0 is not None:                # even ks: no dh == 0 tap
            y = y + fold_dh0
        return y

    # --- bn (InstanceNorm) + LeakyReLU + conv1 -------------------------------
    a1 = _instance_norm_lrelu(x, inv_hw)
    y1 = conv(a1, w1_ref)

    # --- bn2 + LeakyReLU + conv2 (+ folded 1x1 bypass on the raw input) ------
    a2 = _instance_norm_lrelu(y1, inv_hw)
    byp = jnp.dot(wb_ref[...], x.astype(mxu_dtype),
                  preferred_element_type=jnp.float32)
    y2 = conv(a2, w2_ref, fold_dh0=byp)

    # Lane-dense (Cout, H*W) store (H*W a multiple of 128 -> unmasked vst).
    o_ref[...] = y2.astype(o_ref.dtype)


def _boundary_masks(H, W, ks, dil, pad, dtype=jnp.float32):
    """Static per-tap validity masks (grid-invariant kernel inputs).
    Row k of mask_w validates column offset dw = k*dil - pad; row k of
    mask_h validates row offset dh = k*dil - pad."""
    hw = jnp.arange(H * W, dtype=jnp.int32)
    h_idx = hw // W
    w_idx = hw % W
    mw, mh = [], []
    for k in range(ks):
        d = k * dil - pad
        mw.append(((w_idx + d >= 0) & (w_idx + d < W)).astype(dtype))
        mh.append(((h_idx + d >= 0) & (h_idx + d < H)).astype(dtype))
    return jnp.stack(mw), jnp.stack(mh)


def _derive_vmem_limit(Cin, Cout, HW, ks, mxu_itemsize):
    """Size the scoped-VMEM limit from the actual working set, capped below
    the chip's physical VMEM (128 MiB on v5e/v6e, 64 MiB on v7x)."""
    f32 = 4
    act = Cin * HW * f32
    outb = Cout * HW * f32
    io = 2 * (act + outb)                                   # double-buffered blocks
    consts = ((2 * ks * ks + 1) * max(8, Cout) * 128 * mxu_itemsize
              + 2 * ks * HW * f32)                          # weights + masks
    temps = (2 + ks) * act + 4 * outb + ks * Cin * HW * mxu_itemsize
    est = int((io + consts + temps) * 1.5)                  # compiler headroom
    try:
        cap = pltpu.get_tpu_info().vmem_capacity_bytes
    except Exception:
        cap = 64 * 1024 * 1024                              # conservative (v7x)
    return int(min(max(est, 32 * 1024 * 1024), cap * 7 // 8))


def resblock2d(x_nchw, w1_oihw, w2_oihw, wb_oc, *, ks=3, dil=1,
               mxu_dtype=jnp.float32):
    """x_nchw: (N, Cin, H, W); w1: (Cout, Cin, ks, ks); w2: (Cout, Cout, ks, ks);
    wb_oc: (Cout, Cin) 1x1-bypass weight (identity matrix if Cin == Cout).

    mxu_dtype: dtype of the MXU matmul operands.  bfloat16 is recommended on
    every TPU generation (v5e/v6e/v7x MXUs all consume bf16 with f32
    accumulation); all InstanceNorm / LeakyReLU / residual math stays f32."""
    N, Cin, H, W = x_nchw.shape
    Cout = w1_oihw.shape[0]
    pad = int((ks + (ks - 1) * (dil - 1) - 1) / 2)   # same formula as module
    HW = H * W

    # NCHW -> (N, C, H*W): pure reshape, no HBM transpose pass.  H*W should be
    # a multiple of 128 for fully lane-dense loads/stores.
    x_flat = x_nchw.reshape(N, Cin, HW)

    # OIHW -> (ks*ks, O, I): per-tap (Cout, C) matrices, indexed kh*ks+kw in
    # the kernel; cast once in the wrapper to the MXU operand dtype.
    w1_t = jnp.transpose(w1_oihw, (2, 3, 0, 1)).reshape(ks * ks, Cout, Cin)
    w2_t = jnp.transpose(w2_oihw, (2, 3, 0, 1)).reshape(ks * ks, Cout, Cout)
    w1_t = w1_t.astype(mxu_dtype)
    w2_t = w2_t.astype(mxu_dtype)
    wb_mat = wb_oc.astype(mxu_dtype)

    mask_w, mask_h = _boundary_masks(H, W, ks, dil, pad)

    kernel = functools.partial(resblock_kernel, H=H, W=W, ks=ks, dil=dil,
                               pad=pad, mxu_dtype=mxu_dtype)

    vmem_limit = _derive_vmem_limit(Cin, Cout, HW, ks,
                                    jnp.dtype(mxu_dtype).itemsize)

    # TODO(synk): for (C, H*W) slabs that exceed the derived VMEM budget (v7x
    # 64 MiB), add a spatial grid axis with a +/-pad*W halo and split each
    # InstanceNorm into a stats pass + normalize+conv pass (also keeps both
    # v7x TensorCores busy when N is small/odd); and when Cout << 128, pack
    # several images along the lane axis per grid step to amortize MXU fill.
    out_flat = pl.pallas_call(
        kernel,
        out_shape=jax.ShapeDtypeStruct((N, Cout, HW), x_nchw.dtype),
        grid=(N,),
        in_specs=[
            pl.BlockSpec((None, Cin, HW), lambda n: (n, 0, 0)),
            pl.BlockSpec((ks * ks, Cout, Cin), lambda n: (0, 0, 0)),
            pl.BlockSpec((ks * ks, Cout, Cout), lambda n: (0, 0, 0)),
            pl.BlockSpec((Cout, Cin), lambda n: (0, 0)),
            pl.BlockSpec((ks, HW), lambda n: (0, 0)),
            pl.BlockSpec((ks, HW), lambda n: (0, 0)),
        ],
        out_specs=pl.BlockSpec((None, Cout, HW), lambda n: (n, 0, 0)),
        compiler_params=pltpu.CompilerParams(
            dimension_semantics=("parallel",),   # batch axis -> both TCs
            vmem_limit_bytes=vmem_limit),
    )(x_flat, w1_t, w2_t, wb_mat, mask_w, mask_h)

    return out_flat.reshape(N, Cout, H, W)


# -------------------- pure-JAX reference (for checking) --------------------
def _ref_resblock(x, w1, w2, wb_oc, *, ks=3, dil=1):
    pad = int((ks + (ks - 1) * (dil - 1) - 1) / 2)

    def inorm(v):
        m = v.mean(axis=(2, 3), keepdims=True)
        var = ((v - m) ** 2).mean(axis=(2, 3), keepdims=True)
        return (v - m) / jnp.sqrt(var + EPS)

    def lrelu(v):
        return jnp.where(v >= 0, v, LEAKY_SLOPE * v)

    def conv(v, w):
        return lax.conv_general_dilated(
            v, w, window_strides=(1, 1), padding=[(pad, pad), (pad, pad)],
            rhs_dilation=(dil, dil),
            dimension_numbers=('NCHW', 'OIHW', 'NCHW'))

    h = conv(lrelu(inorm(x)), w1)
    h = conv(lrelu(inorm(h)), w2)
    wb_oihw = wb_oc[:, :, None, None]                     # (Cout, Cin, 1, 1)
    byp = lax.conv_general_dilated(
        x, wb_oihw, (1, 1), 'VALID',
        dimension_numbers=('NCHW', 'OIHW', 'NCHW'))
    return h + byp


if __name__ == "__main__":
    # Small shapes consistent with the module: batch=2, in_ch=4, out_ch=8,
    # spatial 16x16, kernel 3.
    N, Cin, Cout, H, W = 2, 4, 8, 16, 16
    ks = 3

    key = jax.random.PRNGKey(0)
    kx, k1, k2, kb = jax.random.split(key, 4)

    x = jax.random.normal(kx, (N, Cin, H, W), dtype=jnp.float32)

    # Deterministic xavier_uniform(gain=1.0) init for conv1 / conv2.
    def xavier(k, shape):
        fan_out = shape[0] * shape[2] * shape[3]
        fan_in = shape[1] * shape[2] * shape[3]
        bound = (6.0 / (fan_in + fan_out)) ** 0.5
        return jax.random.uniform(k, shape, jnp.float32, -bound, bound)

    w1 = xavier(k1, (Cout, Cin, ks, ks))
    w2 = xavier(k2, (Cout, Cout, ks, ks))

    # Bypass 1x1 conv weight (exists because in_ch != out_ch); (Cout, Cin).
    wb_bound = 1.0 / (Cin ** 0.5)
    wb_oc = jax.random.uniform(kb, (Cout, Cin), jnp.float32, -wb_bound, wb_bound)

    # f32 MXU path, dilation 1 and 2 (tight tolerance).
    for dil in (1, 2):
        out = jax.block_until_ready(resblock2d(x, w1, w2, wb_oc, ks=ks, dil=dil))
        ref = _ref_resblock(x, w1, w2, wb_oc, ks=ks, dil=dil)
        assert out.shape == (N, Cout, H, W)
        assert jnp.allclose(out, ref, atol=1e-4, rtol=1e-4), \
            f"dil={dil} max abs err {jnp.max(jnp.abs(out - ref))}"

    # bf16 MXU operands (recommended on v5e / v6e / v7x), f32 accumulation.
    out_bf = jax.block_until_ready(
        resblock2d(x, w1, w2, wb_oc, ks=ks, dil=1, mxu_dtype=jnp.bfloat16))
    ref1 = _ref_resblock(x, w1, w2, wb_oc, ks=ks, dil=1)
    assert jnp.allclose(out_bf, ref1, atol=1e-1, rtol=1e-1), \
        f"bf16 max abs err {jnp.max(jnp.abs(out_bf - ref1))}"

    print("KERNEL_OK")
</pallas_src>

<mosaic_0001>
module attributes {stable_mosaic.version = 11 : i64} {
  func.func @resblock_kernel(%arg0: i32, %arg1: memref<1x4x256xf32, #tpu.memory_space<vmem>>, %arg2: memref<9x8x4xf32, #tpu.memory_space<vmem>>, %arg3: memref<9x8x8xf32, #tpu.memory_space<vmem>>, %arg4: memref<8x4xf32, #tpu.memory_space<vmem>>, %arg5: memref<3x256xf32, #tpu.memory_space<vmem>>, %arg6: memref<3x256xf32, #tpu.memory_space<vmem>>, %arg7: memref<1x8x256xf32, #tpu.memory_space<vmem>>) attributes {dimension_semantics = [#tpu.dimension_semantics<parallel>], iteration_bounds = array<i64: 2>, scalar_prefetch = 0 : i64, scratch_operands = 0 : i64, tpu.core_type = #tpu.core_type<tc>, window_params = [{transform_indices = @transform_0, window_bounds = array<i64: 1, 4, 256>}, {pipeline_mode = #tpu.pipeline_mode<synchronous>, transform_indices = @transform_1, window_bounds = array<i64: 9, 8, 4>}, {pipeline_mode = #tpu.pipeline_mode<synchronous>, transform_indices = @transform_2, window_bounds = array<i64: 9, 8, 8>}, {pipeline_mode = #tpu.pipeline_mode<synchronous>, transform_indices = @transform_3, window_bounds = array<i64: 8, 4>}, {pipeline_mode = #tpu.pipeline_mode<synchronous>, transform_indices = @transform_4, window_bounds = array<i64: 3, 256>}, {pipeline_mode = #tpu.pipeline_mode<synchronous>, transform_indices = @transform_5, window_bounds = array<i64: 3, 256>}, {transform_indices = @transform_6, window_bounds = array<i64: 1, 8, 256>}]} {
    %c0 = arith.constant 0 : index
    %c0_0 = arith.constant 0 : index
    %c0_1 = arith.constant 0 : index
    %0 = vector.load %arg1[%c0, %c0_0, %c0_1] : memref<1x4x256xf32, #tpu.memory_space<vmem>>, vector<1x4x256xf32>
    %1 = vector.shape_cast %0 : vector<1x4x256xf32> to vector<4x256xf32>
    %c0_2 = arith.constant 0 : index
    %c0_3 = arith.constant 0 : index
    %2 = vector.load %arg5[%c0_2, %c0_3] : memref<3x256xf32, #tpu.memory_space<vmem>>, vector<3x256xf32>
    %c0_4 = arith.constant 0 : index
    %c0_5 = arith.constant 0 : index
    %3 = vector.load %arg6[%c0_4, %c0_5] : memref<3x256xf32, #tpu.memory_space<vmem>>, vector<3x256xf32>
    %cst = arith.constant dense<0.000000e+00> : vector<4xf32>
    %4 = vector.multi_reduction <add>, %1, %cst [1] : vector<4x256xf32> to vector<4xf32>
    %5 = vector.shape_cast %4 : vector<4xf32> to vector<4x1xf32>
    %cst_6 = arith.constant 3.906250e-03 : f32
    %6 = vector.broadcast %cst_6 : f32 to vector<4x1xf32>
    %7 = arith.mulf %5, %6 : vector<4x1xf32>
    %8 = vector.broadcast %7 : vector<4x1xf32> to vector<4x256xf32>
    %9 = arith.subf %1, %8 : vector<4x256xf32>
    %10 = arith.mulf %9, %9 : vector<4x256xf32>
    %cst_7 = arith.constant dense<0.000000e+00> : vector<4xf32>
    %11 = vector.multi_reduction <add>, %10, %cst_7 [1] : vector<4x256xf32> to vector<4xf32>
    %12 = vector.shape_cast %11 : vector<4xf32> to vector<4x1xf32>
    %cst_8 = arith.constant 3.906250e-03 : f32
    %13 = vector.broadcast %cst_8 : f32 to vector<4x1xf32>
    %14 = arith.mulf %12, %13 : vector<4x1xf32>
    %cst_9 = arith.constant 9.99999974E-6 : f32
    %15 = vector.broadcast %cst_9 : f32 to vector<4x1xf32>
    %16 = arith.addf %14, %15 : vector<4x1xf32>
    %17 = math.rsqrt %16 : vector<4x1xf32>
    %18 = vector.broadcast %17 : vector<4x1xf32> to vector<4x256xf32>
    %19 = arith.mulf %9, %18 : vector<4x256xf32>
    %cst_10 = arith.constant 0.000000e+00 : f32
    %20 = vector.broadcast %cst_10 : f32 to vector<4x256xf32>
    %21 = arith.cmpf oge, %19, %20 : vector<4x256xf32>
    %cst_11 = arith.constant 0.00999999977 : f32
    %22 = vector.broadcast %cst_11 : f32 to vector<4x256xf32>
    %23 = arith.mulf %22, %19 : vector<4x256xf32>
    %24 = arith.select %21, %19, %23 : vector<4x256xi1>, vector<4x256xf32>
    %c1_i32 = arith.constant 1 : i32
    %25 = tpu.dynamic_rotate %24 by %c1_i32 dim 1 : vector<4x256xf32>, i32 -> vector<4x256xf32>
    %26 = vector.extract_strided_slice %2 {offsets = [0, 0], sizes = [1, 256], strides = [1, 1]} : vector<3x256xf32> to vector<1x256xf32>
    %27 = vector.broadcast %26 : vector<1x256xf32> to vector<4x256xf32>
    %28 = arith.mulf %25, %27 : vector<4x256xf32>
    %c255_i32 = arith.constant 255 : i32
    %29 = tpu.dynamic_rotate %24 by %c255_i32 dim 1 : vector<4x256xf32>, i32 -> vector<4x256xf32>
    %30 = vector.extract_strided_slice %2 {offsets = [2, 0], sizes = [1, 256], strides = [1, 1]} : vector<3x256xf32> to vector<1x256xf32>
    %31 = vector.broadcast %30 : vector<1x256xf32> to vector<4x256xf32>
    %32 = arith.mulf %29, %31 : vector<4x256xf32>
    %c0_12 = arith.constant 0 : index
    %c0_13 = arith.constant 0 : index
    %c0_14 = arith.constant 0 : index
    %33 = vector.load %arg2[%c0_12, %c0_13, %c0_14] : memref<9x8x4xf32, #tpu.memory_space<vmem>>, vector<1x8x4xf32>
    %34 = vector.shape_cast %33 : vector<1x8x4xf32> to vector<8x4xf32>
    %cst_15 = arith.constant dense<0.000000e+00> : vector<8x256xf32>
    %35 = tpu.matmul %34, %28, %cst_15 {dimension_numbers = #tpu.dot_dimension_numbers<[1], [0], [0], [1], [0, 0, 1, 1], [], []>} : vector<8x4xf32>, vector<4x256xf32>, vector<8x256xf32> -> vector<8x256xf32>
    %c1 = arith.constant 1 : index
    %c0_16 = arith.constant 0 : index
    %c0_17 = arith.constant 0 : index
    %36 = vector.load %arg2[%c1, %c0_16, %c0_17] : memref<9x8x4xf32, #tpu.memory_space<vmem>>, vector<1x8x4xf32>
    %37 = vector.shape_cast %36 : vector<1x8x4xf32> to vector<8x4xf32>
    %cst_18 = arith.constant dense<0.000000e+00> : vector<8x256xf32>
    %38 = tpu.matmul %37, %24, %cst_18 {dimension_numbers = #tpu.dot_dimension_numbers<[1], [0], [0], [1], [0, 0, 1, 1], [], []>} : vector<8x4xf32>, vector<4x256xf32>, vector<8x256xf32> -> vector<8x256xf32>
    %39 = arith.addf %35, %38 : vector<8x256xf32>
    %c2 = arith.constant 2 : index
    %c0_19 = arith.constant 0 : index
    %c0_20 = arith.constant 0 : index
    %40 = vector.load %arg2[%c2, %c0_19, %c0_20] : memref<9x8x4xf32, #tpu.memory_space<vmem>>, vector<1x8x4xf32>
    %41 = vector.shape_cast %40 : vector<1x8x4xf32> to vector<8x4xf32>
    %cst_21 = arith.constant dense<0.000000e+00> : vector<8x256xf32>
    %42 = tpu.matmul %41, %32, %cst_21 {dimension_numbers = #tpu.dot_dimension_numbers<[1], [0], [0], [1], [0, 0, 1, 1], [], []>} : vector<8x4xf32>, vector<4x256xf32>, vector<8x256xf32> -> vector<8x256xf32>
    %43 = arith.addf %39, %42 : vector<8x256xf32>
    %c16_i32 = arith.constant 16 : i32
    %44 = tpu.dynamic_rotate %43 by %c16_i32 dim 1 : vector<8x256xf32>, i32 -> vector<8x256xf32>
    %45 = vector.extract_strided_slice %3 {offsets = [0, 0], sizes = [1, 256], strides = [1, 1]} : vector<3x256xf32> to vector<1x256xf32>
    %46 = vector.broadcast %45 : vector<1x256xf32> to vector<8x256xf32>
    %47 = arith.mulf %44, %46 : vector<8x256xf32>
    %c3 = arith.constant 3 : index
    %c0_22 = arith.constant 0 : index
    %c0_23 = arith.constant 0 : index
    %48 = vector.load %arg2[%c3, %c0_22, %c0_23] : memref<9x8x4xf32, #tpu.memory_space<vmem>>, vector<1x8x4xf32>
    %49 = vector.shape_cast %48 : vector<1x8x4xf32> to vector<8x4xf32>
    %cst_24 = arith.constant dense<0.000000e+00> : vector<8x256xf32>
    %50 = tpu.matmul %49, %28, %cst_24 {dimension_numbers = #tpu.dot_dimension_numbers<[1], [0], [0], [1], [0, 0, 1, 1], [], []>} : vector<8x4xf32>, vector<4x256xf32>, vector<8x256xf32> -> vector<8x256xf32>
    %c4 = arith.constant 4 : index
    %c0_25 = arith.constant 0 : index
    %c0_26 = arith.constant 0 : index
    %51 = vector.load %arg2[%c4, %c0_25, %c0_26] : memref<9x8x4xf32, #tpu.memory_space<vmem>>, vector<1x8x4xf32>
    %52 = vector.shape_cast %51 : vector<1x8x4xf32> to vector<8x4xf32>
    %cst_27 = arith.constant dense<0.000000e+00> : vector<8x256xf32>
    %53 = tpu.matmul %52, %24, %cst_27 {dimension_numbers = #tpu.dot_dimension_numbers<[1], [0], [0], [1], [0, 0, 1, 1], [], []>} : vector<8x4xf32>, vector<4x256xf32>, vector<8x256xf32> -> vector<8x256xf32>
    %54 = arith.addf %50, %53 : vector<8x256xf32>
    %c5 = arith.constant 5 : index
    %c0_28 = arith.constant 0 : index
    %c0_29 = arith.constant 0 : index
    %55 = vector.load %arg2[%c5, %c0_28, %c0_29] : memref<9x8x4xf32, #tpu.memory_space<vmem>>, vector<1x8x4xf32>
    %56 = vector.shape_cast %55 : vector<1x8x4xf32> to vector<8x4xf32>
    %cst_30 = arith.constant dense<0.000000e+00> : vector<8x256xf32>
    %57 = tpu.matmul %56, %32, %cst_30 {dimension_numbers = #tpu.dot_dimension_numbers<[1], [0], [0], [1], [0, 0, 1, 1], [], []>} : vector<8x4xf32>, vector<4x256xf32>, vector<8x256xf32> -> vector<8x256xf32>
    %58 = arith.addf %54, %57 : vector<8x256xf32>
    %59 = arith.addf %47, %58 : vector<8x256xf32>
    %c6 = arith.constant 6 : index
    %c0_31 = arith.constant 0 : index
    %c0_32 = arith.constant 0 : index
    %60 = vector.load %arg2[%c6, %c0_31, %c0_32] : memref<9x8x4xf32, #tpu.memory_space<vmem>>, vector<1x8x4xf32>
    %61 = vector.shape_cast %60 : vector<1x8x4xf32> to vector<8x4xf32>
    %cst_33 = arith.constant dense<0.000000e+00> : vector<8x256xf32>
    %62 = tpu.matmul %61, %28, %cst_33 {dimension_numbers = #tpu.dot_dimension_numbers<[1], [0], [0], [1], [0, 0, 1, 1], [], []>} : vector<8x4xf32>, vector<4x256xf32>, vector<8x256xf32> -> vector<8x256xf32>
    %c7 = arith.constant 7 : index
    %c0_34 = arith.constant 0 : index
    %c0_35 = arith.constant 0 : index
    %63 = vector.load %arg2[%c7, %c0_34, %c0_35] : memref<9x8x4xf32, #tpu.memory_space<vmem>>, vector<1x8x4xf32>
    %64 = vector.shape_cast %63 : vector<1x8x4xf32> to vector<8x4xf32>
    %cst_36 = arith.constant dense<0.000000e+00> : vector<8x256xf32>
    %65 = tpu.matmul %64, %24, %cst_36 {dimension_numbers = #tpu.dot_dimension_numbers<[1], [0], [0], [1], [0, 0, 1, 1], [], []>} : vector<8x4xf32>, vector<4x256xf32>, vector<8x256xf32> -> vector<8x256xf32>
    %66 = arith.addf %62, %65 : vector<8x256xf32>
    %c8 = arith.constant 8 : index
    %c0_37 = arith.constant 0 : index
    %c0_38 = arith.constant 0 : index
    %67 = vector.load %arg2[%c8, %c0_37, %c0_38] : memref<9x8x4xf32, #tpu.memory_space<vmem>>, vector<1x8x4xf32>
    %68 = vector.shape_cast %67 : vector<1x8x4xf32> to vector<8x4xf32>
    %cst_39 = arith.constant dense<0.000000e+00> : vector<8x256xf32>
    %69 = tpu.matmul %68, %32, %cst_39 {dimension_numbers = #tpu.dot_dimension_numbers<[1], [0], [0], [1], [0, 0, 1, 1], [], []>} : vector<8x4xf32>, vector<4x256xf32>, vector<8x256xf32> -> vector<8x256xf32>
    %70 = arith.addf %66, %69 : vector<8x256xf32>
    %c240_i32 = arith.constant 240 : i32
    %71 = tpu.dynamic_rotate %70 by %c240_i32 dim 1 : vector<8x256xf32>, i32 -> vector<8x256xf32>
    %72 = vector.extract_strided_slice %3 {offsets = [2, 0], sizes = [1, 256], strides = [1, 1]} : vector<3x256xf32> to vector<1x256xf32>
    %73 = vector.broadcast %72 : vector<1x256xf32> to vector<8x256xf32>
    %74 = arith.mulf %71, %73 : vector<8x256xf32>
    %75 = arith.addf %59, %74 : vector<8x256xf32>
    %cst_40 = arith.constant dense<0.000000e+00> : vector<8xf32>
    %76 = vector.multi_reduction <add>, %75, %cst_40 [1] : vector<8x256xf32> to vector<8xf32>
    %77 = vector.shape_cast %76 : vector<8xf32> to vector<8x1xf32>
    %cst_41 = arith.constant 3.906250e-03 : f32
    %78 = vector.broadcast %cst_41 : f32 to vector<8x1xf32>
    %79 = arith.mulf %77, %78 : vector<8x1xf32>
    %80 = vector.broadcast %79 : vector<8x1xf32> to vector<8x256xf32>
    %81 = arith.subf %75, %80 : vector<8x256xf32>
    %82 = arith.mulf %81, %81 : vector<8x256xf32>
    %cst_42 = arith.constant dense<0.000000e+00> : vector<8xf32>
    %83 = vector.multi_reduction <add>, %82, %cst_42 [1] : vector<8x256xf32> to vector<8xf32>
    %84 = vector.shape_cast %83 : vector<8xf32> to vector<8x1xf32>
    %cst_43 = arith.constant 3.906250e-03 : f32
    %85 = vector.broadcast %cst_43 : f32 to vector<8x1xf32>
    %86 = arith.mulf %84, %85 : vector<8x1xf32>
    %cst_44 = arith.constant 9.99999974E-6 : f32
    %87 = vector.broadcast %cst_44 : f32 to vector<8x1xf32>
    %88 = arith.addf %86, %87 : vector<8x1xf32>
    %89 = math.rsqrt %88 : vector<8x1xf32>
    %90 = vector.broadcast %89 : vector<8x1xf32> to vector<8x256xf32>
    %91 = arith.mulf %81, %90 : vector<8x256xf32>
    %cst_45 = arith.constant 0.000000e+00 : f32
    %92 = vector.broadcast %cst_45 : f32 to vector<8x256xf32>
    %93 = arith.cmpf oge, %91, %92 : vector<8x256xf32>
    %cst_46 = arith.constant 0.00999999977 : f32
    %94 = vector.broadcast %cst_46 : f32 to vector<8x256xf32>
    %95 = arith.mulf %94, %91 : vector<8x256xf32>
    %96 = arith.select %93, %91, %95 : vector<8x256xi1>, vector<8x256xf32>
    %c0_47 = arith.constant 0 : index
    %c0_48 = arith.constant 0 : index
    %97 = vector.load %arg4[%c0_47, %c0_48] : memref<8x4xf32, #tpu.memory_space<vmem>>, vector<8x4xf32>
    %cst_49 = arith.constant dense<0.000000e+00> : vector<8x256xf32>
    %98 = tpu.matmul %97, %1, %cst_49 {dimension_numbers = #tpu.dot_dimension_numbers<[1], [0], [0], [1], [0, 0, 1, 1], [], []>} : vector<8x4xf32>, vector<4x256xf32>, vector<8x256xf32> -> vector<8x256xf32>
    %c1_i32_50 = arith.constant 1 : i32
    %99 = tpu.dynamic_rotate %96 by %c1_i32_50 dim 1 : vector<8x256xf32>, i32 -> vector<8x256xf32>
    %100 = vector.extract_strided_slice %2 {offsets = [0, 0], sizes = [1, 256], strides = [1, 1]} : vector<3x256xf32> to vector<1x256xf32>
    %101 = vector.broadcast %100 : vector<1x256xf32> to vector<8x256xf32>
    %102 = arith.mulf %99, %101 : vector<8x256xf32>
    %c255_i32_51 = arith.constant 255 : i32
    %103 = tpu.dynamic_rotate %96 by %c255_i32_51 dim 1 : vector<8x256xf32>, i32 -> vector<8x256xf32>
    %104 = vector.extract_strided_slice %2 {offsets = [2, 0], sizes = [1, 256], strides = [1, 1]} : vector<3x256xf32> to vector<1x256xf32>
    %105 = vector.broadcast %104 : vector<1x256xf32> to vector<8x256xf32>
    %106 = arith.mulf %103, %105 : vector<8x256xf32>
    %c0_52 = arith.constant 0 : index
    %c0_53 = arith.constant 0 : index
    %c0_54 = arith.constant 0 : index
    %107 = vector.load %arg3[%c0_52, %c0_53, %c0_54] : memref<9x8x8xf32, #tpu.memory_space<vmem>>, vector<1x8x8xf32>
    %108 = vector.shape_cast %107 : vector<1x8x8xf32> to vector<8x8xf32>
    %cst_55 = arith.constant dense<0.000000e+00> : vector<8x256xf32>
    %109 = tpu.matmul %108, %102, %cst_55 {dimension_numbers = #tpu.dot_dimension_numbers<[1], [0], [0], [1], [0, 0, 1, 1], [], []>} : vector<8x8xf32>, vector<8x256xf32>, vector<8x256xf32> -> vector<8x256xf32>
    %c1_56 = arith.constant 1 : index
    %c0_57 = arith.constant 0 : index
    %c0_58 = arith.constant 0 : index
    %110 = vector.load %arg3[%c1_56, %c0_57, %c0_58] : memref<9x8x8xf32, #tpu.memory_space<vmem>>, vector<1x8x8xf32>
    %111 = vector.shape_cast %110 : vector<1x8x8xf32> to vector<8x8xf32>
    %cst_59 = arith.constant dense<0.000000e+00> : vector<8x256xf32>
    %112 = tpu.matmul %111, %96, %cst_59 {dimension_numbers = #tpu.dot_dimension_numbers<[1], [0], [0], [1], [0, 0, 1, 1], [], []>} : vector<8x8xf32>, vector<8x256xf32>, vector<8x256xf32> -> vector<8x256xf32>
    %113 = arith.addf %109, %112 : vector<8x256xf32>
    %c2_60 = arith.constant 2 : index
    %c0_61 = arith.constant 0 : index
    %c0_62 = arith.constant 0 : index
    %114 = vector.load %arg3[%c2_60, %c0_61, %c0_62] : memref<9x8x8xf32, #tpu.memory_space<vmem>>, vector<1x8x8xf32>
    %115 = vector.shape_cast %114 : vector<1x8x8xf32> to vector<8x8xf32>
    %cst_63 = arith.constant dense<0.000000e+00> : vector<8x256xf32>
    %116 = tpu.matmul %115, %106, %cst_63 {dimension_numbers = #tpu.dot_dimension_numbers<[1], [0], [0], [1], [0, 0, 1, 1], [], []>} : vector<8x8xf32>, vector<8x256xf32>, vector<8x256xf32> -> vector<8x256xf32>
    %117 = arith.addf %113, %116 : vector<8x256xf32>
    %c16_i32_64 = arith.constant 16 : i32
    %118 = tpu.dynamic_rotate %117 by %c16_i32_64 dim 1 : vector<8x256xf32>, i32 -> vector<8x256xf32>
    %119 = vector.extract_strided_slice %3 {offsets = [0, 0], sizes = [1, 256], strides = [1, 1]} : vector<3x256xf32> to vector<1x256xf32>
    %120 = vector.broadcast %119 : vector<1x256xf32> to vector<8x256xf32>
    %121 = arith.mulf %118, %120 : vector<8x256xf32>
    %c3_65 = arith.constant 3 : index
    %c0_66 = arith.constant 0 : index
    %c0_67 = arith.constant 0 : index
    %122 = vector.load %arg3[%c3_65, %c0_66, %c0_67] : memref<9x8x8xf32, #tpu.memory_space<vmem>>, vector<1x8x8xf32>
    %123 = vector.shape_cast %122 : vector<1x8x8xf32> to vector<8x8xf32>
    %cst_68 = arith.constant dense<0.000000e+00> : vector<8x256xf32>
    %124 = tpu.matmul %123, %102, %cst_68 {dimension_numbers = #tpu.dot_dimension_numbers<[1], [0], [0], [1], [0, 0, 1, 1], [], []>} : vector<8x8xf32>, vector<8x256xf32>, vector<8x256xf32> -> vector<8x256xf32>
    %c4_69 = arith.constant 4 : index
    %c0_70 = arith.constant 0 : index
    %c0_71 = arith.constant 0 : index
    %125 = vector.load %arg3[%c4_69, %c0_70, %c0_71] : memref<9x8x8xf32, #tpu.memory_space<vmem>>, vector<1x8x8xf32>
    %126 = vector.shape_cast %125 : vector<1x8x8xf32> to vector<8x8xf32>
    %cst_72 = arith.constant dense<0.000000e+00> : vector<8x256xf32>
    %127 = tpu.matmul %126, %96, %cst_72 {dimension_numbers = #tpu.dot_dimension_numbers<[1], [0], [0], [1], [0, 0, 1, 1], [], []>} : vector<8x8xf32>, vector<8x256xf32>, vector<8x256xf32> -> vector<8x256xf32>
    %128 = arith.addf %124, %127 : vector<8x256xf32>
    %c5_73 = arith.constant 5 : index
    %c0_74 = arith.constant 0 : index
    %c0_75 = arith.constant 0 : index
    %129 = vector.load %arg3[%c5_73, %c0_74, %c0_75] : memref<9x8x8xf32, #tpu.memory_space<vmem>>, vector<1x8x8xf32>
    %130 = vector.shape_cast %129 : vector<1x8x8xf32> to vector<8x8xf32>
    %cst_76 = arith.constant dense<0.000000e+00> : vector<8x256xf32>
    %131 = tpu.matmul %130, %106, %cst_76 {dimension_numbers = #tpu.dot_dimension_numbers<[1], [0], [0], [1], [0, 0, 1, 1], [], []>} : vector<8x8xf32>, vector<8x256xf32>, vector<8x256xf32> -> vector<8x256xf32>
    %132 = arith.addf %128, %131 : vector<8x256xf32>
    %133 = arith.addf %132, %98 : vector<8x256xf32>
    %134 = arith.addf %121, %133 : vector<8x256xf32>
    %c6_77 = arith.constant 6 : index
    %c0_78 = arith.constant 0 : index
    %c0_79 = arith.constant 0 : index
    %135 = vector.load %arg3[%c6_77, %c0_78, %c0_79] : memref<9x8x8xf32, #tpu.memory_space<vmem>>, vector<1x8x8xf32>
    %136 = vector.shape_cast %135 : vector<1x8x8xf32> to vector<8x8xf32>
    %cst_80 = arith.constant dense<0.000000e+00> : vector<8x256xf32>
    %137 = tpu.matmul %136, %102, %cst_80 {dimension_numbers = #tpu.dot_dimension_numbers<[1], [0], [0], [1], [0, 0, 1, 1], [], []>} : vector<8x8xf32>, vector<8x256xf32>, vector<8x256xf32> -> vector<8x256xf32>
    %c7_81 = arith.constant 7 : index
    %c0_82 = arith.constant 0 : index
    %c0_83 = arith.constant 0 : index
    %138 = vector.load %arg3[%c7_81, %c0_82, %c0_83] : memref<9x8x8xf32, #tpu.memory_space<vmem>>, vector<1x8x8xf32>
    %139 = vector.shape_cast %138 : vector<1x8x8xf32> to vector<8x8xf32>
    %cst_84 = arith.constant dense<0.000000e+00> : vector<8x256xf32>
    %140 = tpu.matmul %139, %96, %cst_84 {dimension_numbers = #tpu.dot_dimension_numbers<[1], [0], [0], [1], [0, 0, 1, 1], [], []>} : vector<8x8xf32>, vector<8x256xf32>, vector<8x256xf32> -> vector<8x256xf32>
    %141 = arith.addf %137, %140 : vector<8x256xf32>
    %c8_85 = arith.constant 8 : index
    %c0_86 = arith.constant 0 : index
    %c0_87 = arith.constant 0 : index
    %142 = vector.load %arg3[%c8_85, %c0_86, %c0_87] : memref<9x8x8xf32, #tpu.memory_space<vmem>>, vector<1x8x8xf32>
    %143 = vector.shape_cast %142 : vector<1x8x8xf32> to vector<8x8xf32>
    %cst_88 = arith.constant dense<0.000000e+00> : vector<8x256xf32>
    %144 = tpu.matmul %143, %106, %cst_88 {dimension_numbers = #tpu.dot_dimension_numbers<[1], [0], [0], [1], [0, 0, 1, 1], [], []>} : vector<8x8xf32>, vector<8x256xf32>, vector<8x256xf32> -> vector<8x256xf32>
    %145 = arith.addf %141, %144 : vector<8x256xf32>
    %c240_i32_89 = arith.constant 240 : i32
    %146 = tpu.dynamic_rotate %145 by %c240_i32_89 dim 1 : vector<8x256xf32>, i32 -> vector<8x256xf32>
    %147 = vector.extract_strided_slice %3 {offsets = [2, 0], sizes = [1, 256], strides = [1, 1]} : vector<3x256xf32> to vector<1x256xf32>
    %148 = vector.broadcast %147 : vector<1x256xf32> to vector<8x256xf32>
    %149 = arith.mulf %146, %148 : vector<8x256xf32>
    %150 = arith.addf %134, %149 : vector<8x256xf32>
    %c0_90 = arith.constant 0 : index
    %c0_91 = arith.constant 0 : index
    %c0_92 = arith.constant 0 : index
    %151 = vector.load %arg7[%c0_90, %c0_91, %c0_92] : memref<1x8x256xf32, #tpu.memory_space<vmem>>, vector<1x8x256xf32>
    %152 = vector.shape_cast %151 : vector<1x8x256xf32> to vector<8x256xf32>
    %153 = vector.shape_cast %150 : vector<8x256xf32> to vector<1x8x256xf32>
    tpu.vector_store %arg7[%c0_90, %c0_91, %c0_92], %153 {strides = array<i32>} : memref<1x8x256xf32, #tpu.memory_space<vmem>>, vector<1x8x256xf32>,
    return
  }
  func.func @transform_0(%arg0: i32) -> (i32, i32, i32) {
    %c0_i32 = arith.constant 0 : i32
    %c0_i32_0 = arith.constant 0 : i32
    %c0_i32_1 = arith.constant 0 : i32
    return %arg0, %c0_i32, %c0_i32_0 : i32, i32, i32
  }
  func.func @transform_1(%arg0: i32) -> (i32, i32, i32) {
    %c0_i32 = arith.constant 0 : i32
    %c0_i32_0 = arith.constant 0 : i32
    %c0_i32_1 = arith.constant 0 : i32
    %c0_i32_2 = arith.constant 0 : i32
    return %c0_i32, %c0_i32_0, %c0_i32_1 : i32, i32, i32
  }
  func.func @transform_2(%arg0: i32) -> (i32, i32, i32) {
    %c0_i32 = arith.constant 0 : i32
    %c0_i32_0 = arith.constant 0 : i32
    %c0_i32_1 = arith.constant 0 : i32
    %c0_i32_2 = arith.constant 0 : i32
    return %c0_i32, %c0_i32_0, %c0_i32_1 : i32, i32, i32
  }
  func.func @transform_3(%arg0: i32) -> (i32, i32) {
    %c0_i32 = arith.constant 0 : i32
    %c0_i32_0 = arith.constant 0 : i32
    %c0_i32_1 = arith.constant 0 : i32
    return %c0_i32, %c0_i32_0 : i32, i32
  }
  func.func @transform_4(%arg0: i32) -> (i32, i32) {
    %c0_i32 = arith.constant 0 : i32
    %c0_i32_0 = arith.constant 0 : i32
    %c0_i32_1 = arith.constant 0 : i32
    return %c0_i32, %c0_i32_0 : i32, i32
  }
  func.func @transform_5(%arg0: i32) -> (i32, i32) {
    %c0_i32 = arith.constant 0 : i32
    %c0_i32_0 = arith.constant 0 : i32
    %c0_i32_1 = arith.constant 0 : i32
    return %c0_i32, %c0_i32_0 : i32, i32
  }
  func.func @transform_6(%arg0: i32) -> (i32, i32, i32) {
    %c0_i32 = arith.constant 0 : i32
    %c0_i32_0 = arith.constant 0 : i32
    %c0_i32_1 = arith.constant 0 : i32
    return %arg0, %c0_i32, %c0_i32_0 : i32, i32, i32
  }
}

</mosaic_0001>

<bundles_post_ra>
// kernel: tpu_custom_call.1
= control target key start
LH: loop header
LB: loop body
LE: loop exit
PB: predicated region body
PF: predicated region fallthrough
CT: control target
= control target key end

     0   :  { %11 = vsyncpa [#allocation3], 0  ;;  %s2606_s0 = inlined_call_operand.vmem [shape: f32[2,4,256], index: 0, kind: input, shape index: {}]   ;;  %s2607_s1 = inlined_call_operand.vmem [shape: f32[9,8,4], index: 1, kind: input, shape index: {}]   ;;  %s2608_s2 = inlined_call_operand.vmem [shape: f32[9,8,8], index: 2, kind: input, shape index: {}]   ;;  %s2609_s3 = inlined_call_operand.vmem [shape: f32[8,4], index: 3, kind: input, shape index: {}]   ;;  %s2610_s4 = inlined_call_operand.vmem [shape: f32[3,256], index: 4, kind: input, shape index: {}]   ;;  %s2611_s5 = inlined_call_operand.vmem [shape: f32[3,256], index: 5, kind: input, shape index: {}]   ;;  %s2612_s6 = inlined_call_operand.hbm [shape: f32[2,8,256], index: 6, kind: output, shape index: {}]  }
   0x1   :  { %13 = vsyncpa [#allocation3 + $0x1], 0  ;;  %s2251_s21 = smov 0   ;;  %s2253_s22 = smov 0  }
   0x2   :  { %s2255_s23 = smov 0   ;;  %s2257_s24 = smov 0  }
   0x3 LB: > { %s2272_s25 = sadd.s32 4294967295, %s2207_s24   ;;  %s2028_s26 = sadd.s32 4294967294, %s2207_s24   ;;  %s2207_s24 = sphi %s2257_s24, %s2618_s24   ;;  %s2203_s23 = sphi %s2255_s23, %s2617_s23   ;;  %s2199_s22 = sphi %s2253_s22, %s2616_s22   ;;  %s2195_s21 = sphi %s2251_s21, %s2615_s21  }
   0x4   : > { %s2276_s27 = sadd.s32 1, %s2207_s24   ;;  %s157_s28 = sadd.s32 1, %s2203_s23 }
   0x5   : > { %s154_s29 = ssub.s32 %s2207_s24, %s2276_s27  ;;  %p167_p0 = scmp.ne.s32.totalorder %s2203_s23, %s2199_s22 }
   0x6   : > { %p155_p1 = scmp.eq.s32.totalorder %s154_s29, 0  ;;  %p168_p2 = scmp.eq.s32.totalorder %s2272_s25, 1 }
   0x7   : > { %p173_p3 = scmp.ne.s32.totalorder %s2199_s22, %s2195_s21  ;;  %p174_p4 = scmp.eq.s32.totalorder %s2028_s26, 1 }
   0x8   : > { %s2287_s30 = scalar_select %p155_p1, %s2203_s23, %s157_s28  }
   0x9   : > { %p2289_p5 = por %p168_p2, %p167_p0  ;;  %p2293_p6 = por %p174_p4, %p173_p3 }
   0xa   : > { %p2031_p7 = scmp.ge.s32.totalorder %s2207_s24, 1  ;;  %p215_p8 = scmp.lt.s32.totalorder %s2207_s24, 3 }
   0xc   : > { %p216_p9 = pnand %p2031_p7, %p215_p8 }
   0xd   : > { %p245_p10 = scmp.lt.s32.totalorder (!%p216_p9), %s2272_s25, 1  ;;  %s2211_s14 = smov (!%p216_p9), 127  }
   0xe   : > { %219 = sbr.rel (%p216_p9) target bundleno = 1578 (0x62a), region = 44  ;;  %s2212_s15 = smov (!%p216_p9), 1  }
   0xf   : > { %s2213_s29 = smov (!%p216_p9), 16  }
  0x13   : > { %s246_s9 = scalar_select %p245_p10, %s2272_s25, 1  ;;  %vm256_vm0 = vcmask 1043456   ;;  %v2209_v5 = vmov 839922192   ;;  %v267_v7 = vlaneseq  ;;  %v2210_v25 = vmov 0.0   ;;  %v2035_v30 = vld [vmem:[%s2607_s1 + $0x8] sm:$0xff] }
  0x14   : > { %v265_v6 = vunpack.c.l.s4 %v2209_v5  ;;  %433 = vmatprep.mubr.f32.mxu0 %v2210_v25  ;;  %513 = vmatprep.mubr.f32.mxu1 %v2210_v25  ;;  %vm361_vm2 = vcmask 31744   ;;  %v251_v33 = vld [vmem:[%s2610_s4] sm:$0x77]  ;;  %v2042_v58 = vld [vmem:[%s2607_s1 + $0x10] sm:$0xff]  ;;  %v2046_v60 = vld [vmem:[%s2607_s1 + $0x18] sm:$0xff]  ;;  %vm1243_vm9 = vcmask 64512  }
  0x15   : > { %s2095_s10 = sshll.u32 %s246_s9, 3  ;;  %v2314_v9 = vshrl.u32 %v267_v7, 7  ;;  %v2347_v34 = vand.u32 127, %v267_v7  ;;  %v358_v51 = vld [vmem:[%s2607_s1] sm:$0xff]  ;;  %v2054_v61 = vld [vmem:[%s2607_s1 + $0x28] sm:$0xff]  ;;  %v2059_v62 = vld [vmem:[%s2607_s1 + $0x38] sm:$0xff] }
  0x16   : > { %s249_s13 = scalar_lea.vmem %s2606_s0, %s2095_s10  ;;  %v266_v8 = vunpack.c.0.s8 %v265_v6  ;;  %v2047_v59 = vld [vmem:[%s2607_s1 + $0x20] sm:$0xff]  ;;  %v2058_v63 = vld [vmem:[%s2607_s1 + $0x30] sm:$0xff]  ;;  %s2214_s9 = smov 112  }
  0x17   : > { %v2304_v0 = vld [vmem:[%s249_s13] sm:$0xff]  ;;  %v2341_v31 = vsub.s32 0, %v2314_v9  ;;  %v317_v32 = vsub.s32 4, %v2314_v9  ;;  %v2353_v37 = vsub.s32 2, %v2314_v9  ;;  %v344_v38 = vsub.s32 6, %v2314_v9  ;;  %s2215_s13 = smov [#allocation2]  }
  0x18   : > { %v2308_v1 = vcombine.high %v2304_v0, %v2304_v0  ;;  %v257_v2 = vsel %vm256_vm0, %v2304_v0, 0.0  ;;  %v269_v10 = vsub.s32 %v266_v8, %v2314_v9  ;;  %vm307_vm3 = vcmp.lt.s32.totalorder %v2347_v34, 1  ;;  %s2151_s16 = sshll.u32 %s2215_s13, 4  ;;  %s2152_s16 = int_to_ptr.vmem [resolvable:$false] %s2151_s16 }
  0x19   : > { %v314_v35 = vrot.slane %v251_v33, %v2341_v31  ;;  %v318_v36 = vrot.slane %v251_v33, %v317_v32  ;;  %v341_v42 = vrot.slane %v251_v33, %v2353_v37  ;;  %v345_v43 = vrot.slane %v251_v33, %v344_v38  ;;  %s2153_s17 = scalar_lea.vmem %s2152_s16, 512 }
  0x1a   : > { %v258_v3 = vsel %vm256_vm0, %v2308_v1, 0.0  ;;  %vm335_vm4 = vcmp.lt.s32.totalorder %v2347_v34, 127  ;;  %vm608_vm5 = vcmp.lt.s32.totalorder %v2347_v34, 16  ;;  %vm1098_vm6 = vcmp.lt.s32.totalorder %v2347_v34, 112 }
  0x1b   : > { %v259_v4 = vadd.f32 %v258_v3, %v257_v2  ;;  %v2358_v40 = vrot.slane %v314_v35, %v2341_v31  ;;  %v2361_v41 = vrot.slane %v318_v36, %v2341_v31  ;;  %v2374_v49 = vrot.slane %v341_v42, %v2353_v37  ;;  %v2066_v2 = vld [vmem:[%s2607_s1 + $0x40] sm:$0xff] }
  0x1c   : > { %v2377_v50 = vrot.slane %v345_v43, %v2353_v37 }
  0x1d   : > { %260 = vadd.xlane.f32.xlu0 %v259_v4 }
  0xa6   : > { %v261_v11 = vpop.xlane.xlu0 %260 }
  0xa7   : > { %v262_v12 = vmul.f32 0.00390625, %v261_v11 }
  0xa9   : > { %v270_v13 = vrot.slane %v262_v12, %v269_v10 }
  0xab   : > { %v272_v14 = vsub.f32 %v2304_v0, %v270_v13 }
  0xad   : > { %v273_v15 = vmul.f32 %v272_v14, %v272_v14 }
  0xaf   : > { %v275_v16 = vcombine.high %v273_v15, %v273_v15  ;;  %v277_v17 = vsel %vm256_vm0, %v273_v15, 0.0 }
  0xb1   : > { %v278_v18 = vsel %vm256_vm0, %v275_v16, 0.0 }
  0xb2   : > { %v279_v19 = vadd.f32 %v278_v18, %v277_v17 }
  0xb4   : > { %280 = vadd.xlane.f32.xlu0 %v279_v19 }
 0x13d   : > { %v281_v20 = vpop.xlane.xlu0 %280 }
 0x13e   : > { %v282_v21 = vmul.f32 0.00390625, %v281_v20 }
 0x140   : > { %v283_v22 = vadd.f32 1e-05, %v282_v21 }
 0x142   : > { %2143 = vrsqrt.f32 %v283_v22 }
 0x14f   : > { %v2144_v23 = vpop.eup %2143 }
 0x150   : > { %v292_v24 = vrot.slane %v2144_v23, %v269_v10 }
 0x152   : > { %v294_v26 = vmul.f32 %v292_v24, %v272_v14 }
 0x154   : > { %vm295_vm1 = vcmp.ge.f32.partialorder %v294_v26, 0.0  ;;  %v296_v27 = vmul.f32 0.01, %v294_v26 }
 0x156   : > { %v2322_v28 = vsel %vm295_vm1, %v294_v26, %v296_v27 }
 0x157   : > { %331 = vrot.lane.b32.xlu0 %v2322_v28, %s2211_s14  ;;  %301 = vrot.lane.b32.xlu1 %v2322_v28, %s2212_s15  ;;  %v299_v29 = vcombine.high %v2322_v28, %v2322_v28 }
 0x159   : > { %2036 = vmatprep.subr.msk.mxu0 %vm256_vm0, %v299_v29 }
 0x15a   : > { %2037 = vmatpush1.msk.msra.mxu0 %vm256_vm0, %v2322_v28 }
 0x15b   : > { %303 = vrot.lane.b32.xlu1 %v299_v29, %s2212_s15  ;;  %2038 = vmatmul.mubr.msk.f32.vlgmr.msra.gmra.mxu0 %vm361_vm2, %v2035_v30 }
 0x15c   : > { %595 = vmatprep.mubr.f32.mxu0 %v2210_v25 }
 0x15f   : > { %333 = vrot.lane.b32.xlu1 %v299_v29, %s2211_s14 }
 0x1c9   : > { %v302_v39 = vpop.permute.xlu1 %301  ;;  %v332_v52 = vpop.permute.xlu0 %331 }
 0x1cd   : > { %v304_v44 = vpop.permute.xlu1 %303 }
 0x1ce   : > { %v308_v45 = vsel %vm307_vm3, %v302_v39, %v304_v44  ;;  %v309_v46 = vsel %vm307_vm3, %v304_v44, %v302_v39  ;;  %v252_v39 = vld [vmem:[%s2611_s5] sm:$0x77] }
 0x1cf   : > { %v329_v47 = vmul.f32 %v2358_v40, %v309_v46  ;;  %v330_v48 = vmul.f32 %v2361_v41, %v308_v45  ;;  %v615_v42 = vrot.slane %v252_v39, %v2341_v31  ;;  %v619_v43 = vrot.slane %v252_v39, %v317_v32 }
 0x1d1   : > { %2039 = vmatprep.subr.msk.mxu1 %vm256_vm0, %v330_v48  ;;  %v334_v53 = vpop.permute.xlu1 %333  ;;  %v2459_v45 = vrot.slane %v615_v42, %v2341_v31  ;;  %v2462_v46 = vrot.slane %v619_v43, %v2341_v31  ;;  %v2088_v42 = vld [vmem:[%s2608_s2 + $0x40] sm:$0xff] }
 0x1d2   : > { %v336_v54 = vsel %vm335_vm4, %v332_v52, %v334_v53  ;;  %v337_v55 = vsel %vm335_vm4, %v334_v53, %v332_v52  ;;  %2040 = vmatpush1.msk.msra.mxu1 %vm256_vm0, %v329_v47 }
 0x1d3   : > { %v356_v56 = vmul.f32 %v2374_v49, %v336_v54  ;;  %v357_v57 = vmul.f32 %v2377_v50, %v337_v55  ;;  %2041 = vmatmul.mubr.msk.f32.vlgmr.msra.gmra.mxu1 %vm361_vm2, %v358_v51  ;;  %2048 = vmatprep.subr.msk.mxu1 %vm256_vm0, %v299_v29 }
 0x1d4   : > { %2049 = vmatpush1.msk.msra.mxu1 %vm256_vm0, %v2322_v28  ;;  %703 = vmatprep.mubr.f32.mxu1 %v2210_v25 }
 0x1d5   : > { %2043 = vmatprep.subr.msk.mxu0 %vm256_vm0, %v357_v57  ;;  %2055 = vmatprep.subr.msk.mxu1 %vm256_vm0, %v357_v57 }
 0x1d6   : > { %2044 = vmatpush1.msk.msra.mxu0 %vm256_vm0, %v356_v56 }
 0x1d7   : > { %2045 = vmatmul.mubr.msk.f32.vlgmr.msra.gmra.mxu0 %vm361_vm2, %v2042_v58  ;;  %2050 = vmatmul.mubr.msk.f32.vlgmr.msra.gmra.mxu1 %vm361_vm2, %v2047_v59 }
 0x1d8   : > { %2051 = vmatprep.subr.msk.mxu0 %vm256_vm0, %v330_v48  ;;  %2056 = vmatpush1.msk.msra.mxu1 %vm256_vm0, %v356_v56 }
 0x1d9   : > { %2052 = vmatpush1.msk.msra.mxu0 %vm256_vm0, %v329_v47  ;;  %2063 = vmatprep.subr.msk.mxu1 %vm256_vm0, %v330_v48  ;;  %v1108_v48 = vrot.slane %v252_v39, %v344_v38 }
 0x1da   : > { %2060 = vmatprep.subr.msk.mxu0 %vm256_vm0, %v299_v29  ;;  %777 = vmatprep.mubr.f32.mxu0 %v2210_v25 }
 0x1db   : > { %853 = vmatprep.mubr.f32.mxu1 %v2210_v25  ;;  %2053 = vmatmul.mubr.msk.f32.vlgmr.msra.gmra.mxu0 %vm361_vm2, %v2046_v60  ;;  %v2478_v55 = vrot.slane %v1108_v48, %v2353_v37 }
 0x1dc   : > { %2057 = vmatmul.mubr.msk.f32.vlgmr.msra.gmra.mxu1 %vm361_vm2, %v2054_v61  ;;  %2061 = vmatpush1.msk.msra.mxu0 %vm256_vm0, %v2322_v28 }
 0x1dd   : > { %2064 = vmatpush1.msk.msra.mxu1 %vm256_vm0, %v329_v47  ;;  %2067 = vmatprep.subr.msk.mxu0 %vm256_vm0, %v357_v57  ;;  %v1104_v47 = vrot.slane %v252_v39, %v2353_v37  ;;  %v2084_v39 = vld [vmem:[%s2608_s2 + $0x30] sm:$0xff] }
 0x1de   : > { %935 = vmatprep.mubr.f32.mxu0 %v2210_v25  ;;  %1009 = vmatprep.mubr.f32.mxu1 %v2210_v25 }
 0x1df   : > { %2062 = vmatmul.mubr.msk.f32.vlgmr.msra.gmra.mxu0 %vm361_vm2, %v2059_v62  ;;  %2070 = vmatprep.subr.msk.mxu1 %vm256_vm0, %v2308_v1  ;;  %v2475_v31 = vrot.slane %v1104_v47, %v2353_v37 }
 0x1e0   : > { %2065 = vmatmul.mubr.msk.f32.vlgmr.msra.gmra.mxu1 %vm361_vm2, %v2058_v63  ;;  %2068 = vmatpush1.msk.msra.mxu0 %vm256_vm0, %v356_v56 }
 0x1e1   : > { %1085 = vmatprep.mubr.f32.mxu0 %v2210_v25  ;;  %2071 = vmatpush1.msk.msra.mxu1 %vm256_vm0, %v2304_v0 }
 0x1e2   : > { %1217 = vmatprep.mubr.f32.mxu1 %v2210_v25 }
 0x1e3   : > { %2069 = vmatmul.mubr.msk.f32.vlgmr.msra.gmra.mxu0 %vm361_vm2, %v2066_v2 }
 0x1e4   : > { %1311 = vmatprep.mubr.f32.mxu0 %v2210_v25 }
 0x21b   : > { %v435_v1 = vpop.f32.mrf.mxu0 }
 0x21d   : > { %v437_v4 = vpop.f32.mrf.mxu0 }
 0x293   : > { %v515_v3 = vpop.f32.mrf.mxu1 }
 0x294   : > { %v516_v6 = vadd.f32 %v515_v3, %v435_v1 }
 0x295   : > { %v517_v5 = vpop.f32.mrf.mxu1 }
 0x296   : > { %v518_v13 = vadd.f32 %v517_v5, %v437_v4 }
 0x297   : > { %v597_v7 = vpop.f32.mrf.mxu0  ;;  %v705_v8 = vpop.f32.mrf.mxu1 }
 0x298   : > { %v602_v10 = vadd.f32 %v597_v7, %v516_v6 }
 0x299   : > { %v599_v11 = vpop.f32.mrf.mxu0  ;;  %v707_v12 = vpop.f32.mrf.mxu1 }
 0x29a   : > { %604 = vrot.lane.b32.xlu1 %v602_v10, %s2213_s29  ;;  %v603_v14 = vadd.f32 %v599_v11, %v518_v13  ;;  %v1145_v11 = vld [vmem:[%s2609_s3] sm:$0xff] }
 0x29b   : > { %v779_v0 = vpop.f32.mrf.mxu0  ;;  %2072 = vmatmul.mubr.msk.f32.vlgmr.msra.gmra.mxu1 %vm361_vm2, %v1145_v11 }
 0x29c   : > { %v780_v15 = vadd.f32 %v779_v0, %v705_v8  ;;  %v855_v16 = vpop.f32.mrf.mxu1  ;;  %1385 = vmatprep.mubr.f32.mxu1 %v2210_v25 }
 0x29d   : > { %v781_v17 = vpop.f32.mrf.mxu0 }
 0x29e   : > { %v860_v18 = vadd.f32 %v855_v16, %v780_v15  ;;  %v782_v19 = vadd.f32 %v781_v17, %v707_v12  ;;  %v857_v20 = vpop.f32.mrf.mxu1  ;;  %606 = vrot.lane.b32.xlu1 %v603_v14, %s2213_s29 }
 0x29f   : > { %v937_v21 = vpop.f32.mrf.mxu0 }
 0x2a0   : > { %v861_v22 = vadd.f32 %v857_v20, %v782_v19  ;;  %v1011_v23 = vpop.f32.mrf.mxu1 }
 0x2a1   : > { %v939_v24 = vpop.f32.mrf.mxu0  ;;  %v1012_v26 = vadd.f32 %v1011_v23, %v937_v21 }
 0x2a2   : > { %v1013_v27 = vpop.f32.mrf.mxu1 }
 0x2a3   : > { %v1087_v28 = vpop.f32.mrf.mxu0  ;;  %v1014_v33 = vadd.f32 %v1013_v27, %v939_v24  ;;  %v1240_v27 = vld [vmem:[%s2608_s2] sm:$0xff] }
 0x2a4   : > { %v1092_v29 = vadd.f32 %v1087_v28, %v1012_v26 }
 0x2a5   : > { %v1089_v30 = vpop.f32.mrf.mxu0 }
 0x2a6   : > { %1094 = vrot.lane.b32.xlu1 %v1092_v29, %s2214_s9  ;;  %v1093_v35 = vadd.f32 %v1089_v30, %v1014_v33 }
 0x2aa   : > { %1096 = vrot.lane.b32.xlu1 %v1093_v35, %s2214_s9  ;;  %v2079_v35 = vld [vmem:[%s2608_s2 + $0x20] sm:$0xff] }
 0x30c   : > { %v605_v36 = vpop.permute.xlu1 %604 }
 0x310   : > { %v607_v44 = vpop.permute.xlu1 %606 }
 0x311   : > { %v609_v51 = vsel %vm608_vm5, %v605_v36, %v607_v44  ;;  %v610_v32 = vsel %vm608_vm5, %v607_v44, %v605_v36  ;;  %v2085_v36 = vld [vmem:[%s2608_s2 + $0x38] sm:$0xff] }
 0x312   : > { %v630_v53 = vmul.f32 %v2459_v45, %v610_v32  ;;  %v631_v54 = vmul.f32 %v2462_v46, %v609_v51 }
 0x314   : > { %v862_v57 = vadd.f32 %v860_v18, %v630_v53  ;;  %v863_v58 = vadd.f32 %v861_v22, %v631_v54  ;;  %v2073_v18 = vld [vmem:[%s2608_s2 + $0x8] sm:$0xff] }
 0x318   : > { %v1095_v52 = vpop.permute.xlu1 %1094 }
 0x31c   : > { %v1097_v9 = vpop.permute.xlu1 %1096 }
 0x31d   : > { %v1099_v38 = vsel %vm1098_vm6, %v1095_v52, %v1097_v9  ;;  %v1100_v56 = vsel %vm1098_vm6, %v1097_v9, %v1095_v52 }
 0x31e   : > { %v1119_v59 = vmul.f32 %v2475_v31, %v1099_v38  ;;  %v1120_v60 = vmul.f32 %v2478_v55, %v1100_v56 }
 0x320   : > { %v1121_v61 = vadd.f32 %v1119_v59, %v862_v57  ;;  %v1122_v62 = vadd.f32 %v1120_v60, %v863_v58 }
 0x322   : > { %v1123_v63 = vadd.f32 %v1122_v62, %v1121_v61 }
 0x324   : > { %1124 = vadd.xlane.f32.xlu1 %v1123_v63 }
 0x35b   : > { %v1219_v43 = vpop.f32.mrf.mxu1 }
 0x35d   : > { %v1221_v44 = vpop.f32.mrf.mxu1 }
 0x3ad   : > { %v1125_v2 = vpop.xlane.xlu1 %1124 }
 0x3ae   : > { %v1126_v37 = vmul.f32 0.00390625, %v1125_v2 }
 0x3b0   : > { %v1127_v1 = vsub.f32 %v1121_v61, %v1126_v37  ;;  %v1128_v3 = vsub.f32 %v1122_v62, %v1126_v37 }
 0x3b2   : > { %v1129_v4 = vmul.f32 %v1127_v1, %v1127_v1  ;;  %v1130_v5 = vmul.f32 %v1128_v3, %v1128_v3 }
 0x3b4   : > { %v1131_v6 = vadd.f32 %v1130_v5, %v1129_v4 }
 0x3b6   : > { %1132 = vadd.xlane.f32.xlu0 %v1131_v6 }
 0x43f   : > { %v1133_v7 = vpop.xlane.xlu0 %1132 }
 0x440   : > { %v1134_v8 = vmul.f32 0.00390625, %v1133_v7 }
 0x442   : > { %v1135_v10 = vadd.f32 1e-05, %v1134_v8 }
 0x444   : > { %2145 = vrsqrt.f32 %v1135_v10 }
 0x451   : > { %v2146_v12 = vpop.eup %2145 }
 0x452   : > { %v1138_v13 = vmul.f32 %v2146_v12, %v1128_v3  ;;  %v1137_v0 = vmul.f32 %v2146_v12, %v1127_v1 }
 0x454   : > { %vm1140_vm7 = vcmp.ge.f32.partialorder %v1138_v13, 0.0  ;;  %v1142_v14 = vmul.f32 0.01, %v1138_v13  ;;  %vm1139_vm8 = vcmp.ge.f32.partialorder %v1137_v0, 0.0  ;;  %v1141_v15 = vmul.f32 0.01, %v1137_v0 }
 0x456   : > { %v1144_v16 = vsel %vm1140_vm7, %v1138_v13, %v1142_v14  ;;  %v1143_v17 = vsel %vm1139_vm8, %v1137_v0, %v1141_v15 }
 0x457   : > { %1226 = vrot.lane.b32.xlu1 %v1144_v16, %s2212_s15  ;;  %1277 = vmatprep.subr.mxu0 %v1144_v16 }
 0x458   : > { %1224 = vrot.lane.b32.xlu0 %v1143_v17, %s2212_s15  ;;  %1278 = vmatpush1.msra.mxu0 %v1143_v17 }
 0x459   : > { %2074 = vmatmul.mubr.msk.f32.vlgmr.msra.gmra.mxu0 %vm1243_vm9, %v2073_v18 }
 0x45a   : > { %1461 = vmatprep.mubr.f32.mxu0 %v2210_v25 }
 0x45b   : > { %1232 = vrot.lane.b32.xlu1 %v1143_v17, %s2211_s14 }
 0x45c   : > { %1234 = vrot.lane.b32.xlu0 %v1144_v16, %s2211_s14 }
 0x4c9   : > { %v1227_v19 = vpop.permute.xlu1 %1226 }
 0x4ca   : > { %v1225_v20 = vpop.permute.xlu0 %1224 }
 0x4cb   : > { %v1228_v21 = vsel %vm307_vm3, %v1225_v20, %v1227_v19  ;;  %v1229_v22 = vsel %vm307_vm3, %v1227_v19, %v1225_v20 }
 0x4cc   : > { %v1230_v23 = vmul.f32 %v1229_v22, %v2358_v40  ;;  %v1231_v24 = vmul.f32 %v1228_v21, %v2361_v41  ;;  %v2076_v41 = vld [vmem:[%s2608_s2 + $0x10] sm:$0xff] }
 0x4cd   : > { %v1233_v26 = vpop.permute.xlu1 %1232 }
 0x4ce   : > { %1351 = vmatprep.subr.mxu1 %v1231_v24  ;;  %v1235_v28 = vpop.permute.xlu0 %1234 }
 0x4cf   : > { %v1236_v29 = vsel %vm335_vm4, %v1233_v26, %v1235_v28  ;;  %v1237_v30 = vsel %vm335_vm4, %v1235_v28, %v1233_v26  ;;  %1352 = vmatpush1.msra.mxu1 %v1230_v23 }
 0x4d0   : > { %v1238_v33 = vmul.f32 %v1236_v29, %v2374_v49  ;;  %v1239_v40 = vmul.f32 %v1237_v30, %v2377_v50  ;;  %2075 = vmatmul.mubr.msk.f32.vlgmr.msra.gmra.mxu1 %vm1243_vm9, %v1240_v27  ;;  %1515 = vmatprep.subr.mxu1 %v1144_v16  ;;  %v2078_v49 = vld [vmem:[%s2608_s2 + $0x18] sm:$0xff]  ;;  %v2082_v50 = vld [vmem:[%s2608_s2 + $0x28] sm:$0xff] }
 0x4d1   : > { %1516 = vmatpush1.msra.mxu1 %v1143_v17  ;;  %1549 = vmatprep.mubr.f32.mxu1 %v2210_v25 }
 0x4d2   : > { %1427 = vmatprep.subr.mxu0 %v1239_v40  ;;  %1665 = vmatprep.subr.mxu1 %v1239_v40 }
 0x4d3   : > { %1428 = vmatpush1.msra.mxu0 %v1238_v33 }
 0x4d4   : > { %2077 = vmatmul.mubr.msk.f32.vlgmr.msra.gmra.mxu0 %vm1243_vm9, %v2076_v41  ;;  %2080 = vmatmul.mubr.msk.f32.vlgmr.msra.gmra.mxu1 %vm1243_vm9, %v2079_v35 }
 0x4d5   : > { %1589 = vmatprep.subr.mxu0 %v1231_v24  ;;  %1666 = vmatpush1.msra.mxu1 %v1238_v33 }
 0x4d6   : > { %1590 = vmatpush1.msra.mxu0 %v1230_v23  ;;  %1823 = vmatprep.subr.mxu1 %v1231_v24 }
 0x4d7   : > { %1749 = vmatprep.subr.mxu0 %v1144_v16  ;;  %1623 = vmatprep.mubr.f32.mxu0 %v2210_v25 }
 0x4d8   : > { %1699 = vmatprep.mubr.f32.mxu1 %v2210_v25  ;;  %2081 = vmatmul.mubr.msk.f32.vlgmr.msra.gmra.mxu0 %vm1243_vm9, %v2078_v49 }
 0x4d9   : > { %2083 = vmatmul.mubr.msk.f32.vlgmr.msra.gmra.mxu1 %vm1243_vm9, %v2082_v50  ;;  %1750 = vmatpush1.msra.mxu0 %v1143_v17 }
 0x4da   : > { %1824 = vmatpush1.msra.mxu1 %v1230_v23  ;;  %1899 = vmatprep.subr.mxu0 %v1239_v40 }
 0x4db   : > { %1783 = vmatprep.mubr.f32.mxu0 %v2210_v25  ;;  %1857 = vmatprep.mubr.f32.mxu1 %v2210_v25 }
 0x4dc   : > { %2086 = vmatmul.mubr.msk.f32.vlgmr.msra.gmra.mxu0 %vm1243_vm9, %v2085_v36 }
 0x4dd   : > { %1900 = vmatpush1.msra.mxu0 %v1238_v33  ;;  %2087 = vmatmul.mubr.msk.f32.vlgmr.msra.gmra.mxu1 %vm1243_vm9, %v2084_v39 }
 0x4de   : > { %1933 = vmatprep.mubr.f32.mxu0 %v2210_v25 }
 0x4e0   : > { %2089 = vmatmul.mubr.msk.f32.vlgmr.msra.gmra.mxu0 %vm1243_vm9, %v2088_v42 }
 0x519   : > { %v1313_v47 = vpop.f32.mrf.mxu0 }
 0x51b   : > { %v1315_v51 = vpop.f32.mrf.mxu0 }
 0x590   : > { %v1387_v48 = vpop.f32.mrf.mxu1 }
 0x591   : > { %v1388_v52 = vadd.f32 %v1387_v48, %v1313_v47 }
 0x592   : > { %v1389_v32 = vpop.f32.mrf.mxu1 }
 0x593   : > { %v1390_v9 = vadd.f32 %v1389_v32, %v1315_v51 }
 0x594   : > { %v1463_v53 = vpop.f32.mrf.mxu0  ;;  %v1551_v54 = vpop.f32.mrf.mxu1 }
 0x595   : > { %v1468_v38 = vadd.f32 %v1463_v53, %v1388_v52 }
 0x596   : > { %v1465_v56 = vpop.f32.mrf.mxu0  ;;  %v1553_v57 = vpop.f32.mrf.mxu1 }
 0x597   : > { %v1469_v58 = vadd.f32 %v1465_v56, %v1390_v9  ;;  %1470 = vrot.lane.b32.xlu1 %v1468_v38, %s2213_s29 }
 0x598   : > { %v1625_v59 = vpop.f32.mrf.mxu0 }
 0x599   : > { %v1626_v25 = vadd.f32 %v1625_v59, %v1551_v54  ;;  %v1701_v60 = vpop.f32.mrf.mxu1  ;;  %1472 = vrot.lane.b32.xlu0 %v1469_v58, %s2213_s29  ;;  %s242_s29 = sand.u32 1, %s2199_s22  }
 0x59a   : > { %v1627_v61 = vpop.f32.mrf.mxu0  ;;  %s2032_s19 = sshll.u32 %s242_s29, 4 }
 0x59b   : > { %v1706_v62 = vadd.f32 %v1701_v60, %v1626_v25  ;;  %v1628_v63 = vadd.f32 %v1627_v61, %v1553_v57  ;;  %v1703_v2 = vpop.f32.mrf.mxu1  ;;  %s244_s20 = scalar_lea.vmem [#allocation2], %s2032_s19 }
 0x59c   : > { %v1785_v37 = vpop.f32.mrf.mxu0  ;;  %s1969_s26 = sshll.u32 %s244_s20, 4  ;;  %s1970_s26 = int_to_ptr.vmem [resolvable:$true] %s1969_s26 }
 0x59d   : > { %v1707_v1 = vadd.f32 %v1703_v2, %v1628_v63  ;;  %v1859_v3 = vpop.f32.mrf.mxu1  ;;  %v1708_v19 = vadd.f32 %v1706_v62, %v1219_v43  ;;  %s2147_s12 = scalar_lea.vmem %s1970_s26, 256  ;;  %p2154_p0 = scmp.lt.s32.totalorder %s1970_s26, %s2152_s16 }
 0x59e   : > { %v1787_v4 = vpop.f32.mrf.mxu0  ;;  %v1860_v6 = vadd.f32 %v1859_v3, %v1785_v37  ;;  %p2148_p11 = scmp.ne.s32.totalorder %s1970_s26, %s2147_s12  ;;  %p2155_p1 = scmp.lt.s32.totalorder %s2153_s17, %s2147_s12 }
 0x59f   : > { %v1709_v5 = vadd.f32 %v1707_v1, %v1221_v44  ;;  %v1861_v7 = vpop.f32.mrf.mxu1 }
 0x5a0   : > { %v1935_v8 = vpop.f32.mrf.mxu0  ;;  %v1862_v10 = vadd.f32 %v1861_v7, %v1787_v4  ;;  %p2149_p12 = pnand %p2148_p11, %p2289_p5  ;;  %p2156_p2 = por %p2155_p1, %p2154_p0 }
 0x5a1   : > { %v1940_v11 = vadd.f32 %v1935_v8, %v1860_v6 }
 0x5a2   : > { %v1937_v12 = vpop.f32.mrf.mxu0  ;;  %p2150_p13 = pneg %p2149_p12 }
 0x5a3   : > { %v1941_v13 = vadd.f32 %v1937_v12, %v1862_v10  ;;  %1942 = vrot.lane.b32.xlu1 %v1940_v11, %s2214_s9 }
 0x5a4   : > { %p2157_p3 = pnand %p2156_p2, %p2150_p13 }
 0x5a5   : > { %1944 = vrot.lane.b32.xlu0 %v1941_v13, %s2214_s9  ;;  %s2096_s9 = sshll.u32 %s2272_s25, 8  ;;  %s1955_s25 = scalar_lea.sflag [#allocation3], %s242_s29 }
 0x5a6   : > { %s2571_s11 = scalar_lea.hbm %s2612_s6, %s2096_s9 }
 0x609   : > { %v1471_v14 = vpop.permute.xlu1 %1470 }
 0x60b   : > { %v1473_v0 = vpop.permute.xlu0 %1472 }
 0x60c   : > { %v1474_v15 = vsel %vm608_vm5, %v1471_v14, %v1473_v0  ;;  %v1475_v16 = vsel %vm608_vm5, %v1473_v0, %v1471_v14 }
 0x60d   : > { %v1476_v17 = vmul.f32 %v1475_v16, %v2459_v45  ;;  %v1477_v18 = vmul.f32 %v1474_v15, %v2462_v46 }
 0x60f   : > { %v1710_v24 = vadd.f32 %v1708_v19, %v1476_v17  ;;  %v1711_v26 = vadd.f32 %v1709_v5, %v1477_v18 }
 0x615   : > { %v1943_v20 = vpop.permute.xlu1 %1942 }
 0x617   : > { %v1945_v21 = vpop.permute.xlu0 %1944 }
 0x618   : > { %v1946_v22 = vsel %vm1098_vm6, %v1943_v20, %v1945_v21  ;;  %v1947_v23 = vsel %vm1098_vm6, %v1945_v21, %v1943_v20 }
 0x619   : > { %v1948_v27 = vmul.f32 %v1946_v22, %v2475_v31  ;;  %v1949_v45 = vmul.f32 %v1947_v23, %v2478_v55 }
 0x61b   : > { %v1950_v46 = vadd.f32 %v1948_v27, %v1710_v24  ;;  %v1951_v28 = vadd.f32 %v1949_v45, %v1711_v26 }
 0x61d   : > { %1952 = vst [vmem:[%s244_s20] sm:$0xff] %v1950_v46  ;;  %1953 = vst [vmem:[%s244_s20 + $0x8] sm:$0xff] %v1951_v28 }
 0x61e   : > { %2160 = shalt.err (!%p2157_p3)
}
 0x61f   : > { %s2161_s15 = scalar_lea.hbm %s2571_s11, 256  ;;  %s2165_s29 = scalar_lea.hbm %s2612_s6, 512 }
 0x620   : > { %p2162_p4 = scmp.ne.s32.totalorder %s2571_s11, %s2161_s15  ;;  %p2166_p9 = scmp.lt.s32.totalorder %s2571_s11, %s2612_s6 }
 0x621   : > { %p2167_p10 = scmp.lt.s32.totalorder %s2165_s29, %s2161_s15 }
 0x622   : > { %p2163_p7 = pnand %p2162_p4, %p2289_p5 }
 0x623   : > { %p2168_p11 = por %p2167_p10, %p2166_p9 }
 0x624   : > { %p2164_p8 = pneg %p2163_p7 }
 0x626   : > { %p2169_p12 = pnand %p2168_p11, %p2164_p8 }
 0x628   : > { %2172 = shalt.err (!%p2169_p12)
}
 0x629   : > { %2097 = dma.vmem_to_hbm [thread:$0]  (%p2289_p5), %s1970_s26, 256, %s2571_s11, %s1955_s25  }
 0x62a PF: > { %p2103_p13 = scmp.ge.s32.totalorder %s2207_s24, 2  ;;  %s1981_s20 = sand.u32 1, %s2195_s21  }
 0x62b   : > { %s1982_s28 = scalar_lea.sflag [#allocation3], %s1981_s20 }
 0x62c   : > { %p2100_p0 = pnand %p2103_p13, %p2293_p6 }
 0x62e   : > { %p2101_p1 = pneg %p2100_p0 }
 0x630   : > { %2190 = dma.done.wait (%p2101_p1), %s1982_s28, 256  }
 0x631   : > { %2192 = vsyncadd (%p2101_p1), %s1982_s28, 4294967040  ;;  %p16_p2 = scmp.ge.s32.totalorder %s2276_s27, 4   ;;  %s2615_s21 = smov %s2199_s22 }
 0x632   : > { %s2616_s22 = smov %s2203_s23  ;;  %s2617_s23 = smov %s2287_s30 }
 0x633   : > { %s2618_s24 = smov %s2276_s27  ;;  %18 = sbr.rel (!%p16_p2) target bundleno = 3 (0x3), region = 95 }
 0x638   :  { %1987 = vsyncpa [#allocation3], 1 }
 0x639   :  { %1989 = vsyncpa [#allocation3 + $0x1], 1 }

</bundles_post_ra>
